<compile_context>
chip_gen: v7x
topology: tpu7x:2x2x1
jax: 0.10.0
libtpu: 0.0.40
codegen_flags: <defaults>
</compile_context>

<pallas_src>
import functools

import jax
import jax.numpy as jnp
from jax.experimental import pallas as pl
from jax.experimental.pallas import tpu as pltpu

NEG_SLOPE = 0.2
BN_EPS = 1e-5
TILE_CAP = 2048          # max lane-tile (P columns) per grid step; multiple of 128

_VMEM_BUDGET = None
_COMPILER_PARAMS = None


def _round_up(x, m):
    return ((x + m - 1) // m) * m


def _vmem_budget_bytes():
    """Generation-aware VMEM budget (3/4 of physical, capped at 96 MiB)."""
    global _VMEM_BUDGET
    if _VMEM_BUDGET is None:
        cap = None
        try:
            cap = getattr(pltpu.get_tpu_info(), "vmem_capacity_bytes", None)
        except Exception:
            cap = None
        if not cap:
            cap = 64 * 1024 * 1024          # conservative fallback: v7x physical VMEM
        _VMEM_BUDGET = min(int(cap) * 3 // 4, 96 * 1024 * 1024)
    return _VMEM_BUDGET


def _compiler_params():
    global _COMPILER_PARAMS
    if _COMPILER_PARAMS is None:
        _COMPILER_PARAMS = pltpu.CompilerParams(
            dimension_semantics=("parallel",),   # shard P-blocks across TCs (v7x megacore)
            vmem_limit_bytes=_vmem_budget_bytes(),
        )
    return _COMPILER_PARAMS


def _lane_tile(p):
    """Largest 128-multiple lane tile <= TILE_CAP covering p columns."""
    return min(TILE_CAP, _round_up(p, 128))


def _pick_conv_tile(p, k, cout, itemsize):
    """Lane tile for the conv kernel, shrunk to fit the VMEM budget."""
    tile = _lane_tile(p)
    budget = _vmem_budget_bytes() // 2          # headroom for compiler scratch / epilogue
    while tile > 128:
        foot = (2 * k * tile * itemsize         # double-buffered slab tile
                + 2 * cout * tile * 4           # double-buffered output tile (<= f32)
                + cout * k * itemsize           # resident weights
                + 4 * cout * 128 * 4)           # BN partial-stat blocks
        if foot <= budget:
            break
        tile -= 128
    return tile


# ----------------------------- Pallas kernels ------------------------------ #

def _conv_kernel(x_ref, w_ref, b_ref, o_ref, *, apply_lrelu):
    """(Cout, K) @ (K, TILE_P) + bias [+ LeakyReLU]; lane-dense (Cout, TILE_P) store."""
    acc = jnp.dot(w_ref[...], x_ref[...], preferred_element_type=jnp.float32)
    acc = acc + b_ref[...]
    if apply_lrelu:
        acc = jnp.where(acc >= 0, acc, acc * NEG_SLOPE)
    o_ref[...] = acc.astype(o_ref.dtype)


def _conv_stats_kernel(x_ref, w_ref, b_ref, o_ref, sum_ref, ssq_ref):
    """Conv matmul + bias; emits bias-centred per-block BatchNorm partial stats."""
    z = jnp.dot(w_ref[...], x_ref[...], preferred_element_type=jnp.float32)
    o_ref[...] = (z + b_ref[...]).astype(o_ref.dtype)
    # Stats are centred around the bias (z = y - bias): zero-padded slab columns
    # contribute exactly 0 (no pad-row correction needed) and E[z^2]-E[z]^2 is
    # better conditioned than the uncentred single-pass form.  Cross-lane (XLU)
    # reduce; value/128 replicated across the 128-lane stats block so the
    # wrapper-side sum over all lanes/blocks recovers the true totals.
    s = jnp.sum(z, axis=-1, keepdims=True) * (1.0 / 128.0)
    q = jnp.sum(z * z, axis=-1, keepdims=True) * (1.0 / 128.0)
    sum_ref[...] = jnp.broadcast_to(s, sum_ref.shape)
    ssq_ref[...] = jnp.broadcast_to(q, ssq_ref.shape)


def _avgpool_kernel(xt_ref, r_ref, o_ref):
    """AvgPool2d(3,2,1,count_include_pad=False): sum of 9 taps * (1/valid count)."""
    s = xt_ref[0]
    for t in range(1, 9):
        s = s + xt_ref[t]
    o_ref[...] = s * r_ref[...]


# ------------------------------ Pallas wrappers ----------------------------- #

def conv2d_pallas(x_cnhw, w_mat, bias, *, stride, apply_lrelu, emit_stats,
                  compute_dtype=jnp.bfloat16, out_dtype=jnp.float32, kw=4, pad=2):
    """x: (Cin, N, H, W) channel-major.  w_mat: (Cout, 16*Cin).  bias: (Cout,) f32.

    Returns (y (Cout, N, Ho, Wo) in out_dtype, stats) where stats = (mean, var)
    biased batch statistics (BatchNorm training mode) or None.
    """
    Cin, N, H, W = x_cnhw.shape
    Cout, K = w_mat.shape
    Ho = (H + 2 * pad - kw) // stride + 1
    Wo = (W + 2 * pad - kw) // stride + 1
    P = N * Ho * Wo

    # im2col slab in XLA glue, channel-major with P on the 128-lane axis: (K, P).
    # TODO(synk): gather halo windows in-kernel from padded HBM (pl.ANY + manual
    # double-buffered DMA) to avoid materializing this slab at all.
    x = x_cnhw.astype(compute_dtype)               # bf16 slab halves HBM traffic
    xp = jnp.pad(x, ((0, 0), (0, 0), (pad, pad), (pad, pad)))
    taps = [xp[:, :, i:i + stride * (Ho - 1) + 1:stride,
                   j:j + stride * (Wo - 1) + 1:stride]
            for i in range(kw) for j in range(kw)]
    slab = jnp.concatenate(taps, axis=0).reshape(K, P)   # K order = (kh, kw, cin)

    itemsize = jnp.dtype(compute_dtype).itemsize
    tile_p = _pick_conv_tile(P, K, Cout, itemsize)
    P_pad = _round_up(P, tile_p)
    if P_pad != P:
        slab = jnp.pad(slab, ((0, 0), (0, P_pad - P)))
    n_blk = P_pad // tile_p

    w = w_mat.astype(compute_dtype)
    b2 = bias.reshape(Cout, 1).astype(jnp.float32)

    # TODO(synk): pin w/b with pipeline_mode=pl.Buffered(1) once tiles approach
    # the v7x VMEM ceiling (constant index_map already avoids re-DMA today).
    in_specs = [
        pl.BlockSpec((K, tile_p), lambda i: (0, i)),   # slab tile (pipelined)
        pl.BlockSpec((Cout, K), lambda i: (0, 0)),     # weights stay resident
        pl.BlockSpec((Cout, 1), lambda i: (0, 0)),     # bias stays resident
    ]
    y_spec = pl.BlockSpec((Cout, tile_p), lambda i: (0, i))

    if emit_stats:
        y, psum, pssq = pl.pallas_call(
            _conv_stats_kernel,
            grid=(n_blk,),
            in_specs=in_specs,
            out_specs=(y_spec,
                       pl.BlockSpec((Cout, 128), lambda i: (0, i)),
                       pl.BlockSpec((Cout, 128), lambda i: (0, i))),
            out_shape=(jax.ShapeDtypeStruct((Cout, P_pad), out_dtype),
                       jax.ShapeDtypeStruct((Cout, n_blk * 128), jnp.float32),
                       jax.ShapeDtypeStruct((Cout, n_blk * 128), jnp.float32)),
            compiler_params=_compiler_params(),
        )(slab, w, b2)
        zsum = jnp.sum(psum, axis=-1)     # sum of (y - bias) over the P valid columns
        zssq = jnp.sum(pssq, axis=-1)
        mu_z = zsum / P
        var = jnp.maximum(zssq / P - mu_z * mu_z, 0.0)   # biased (training) variance
        mean = mu_z + bias
        stats = (mean, var)
    else:
        y = pl.pallas_call(
            functools.partial(_conv_kernel, apply_lrelu=apply_lrelu),
            grid=(n_blk,),
            in_specs=in_specs,
            out_specs=y_spec,
            out_shape=jax.ShapeDtypeStruct((Cout, P_pad), out_dtype),
            compiler_params=_compiler_params(),
        )(slab, w, b2)
        stats = None

    return y[:, :P].reshape(Cout, N, Ho, Wo), stats


def avgpool3_pallas(x_cnhw):
    """AvgPool2d(3, stride=2, padding=1, count_include_pad=False), channel-major."""
    C, N, H, W = x_cnhw.shape
    Ho = (H + 2 - 3) // 2 + 1
    Wo = (W + 2 - 3) // 2 + 1
    P = N * Ho * Wo

    # TODO(synk): form the 9 taps in-kernel from a padded row-strip block
    # (pltpu.roll column shifts) instead of materializing the 9-way stack.
    xp = jnp.pad(x_cnhw, ((0, 0), (0, 0), (1, 1), (1, 1)))
    taps = [xp[:, :, i:i + 2 * (Ho - 1) + 1:2, j:j + 2 * (Wo - 1) + 1:2]
            for i in range(3) for j in range(3)]
    xt = jnp.stack(taps, 0).reshape(9, C, P)

    # #valid (non-pad) taps depends only on (ho, wo): lane-dense reciprocal counts.
    oh = jnp.arange(Ho)
    ow = jnp.arange(Wo)
    rows = jnp.minimum(2 * oh + 2, H) - jnp.maximum(2 * oh - 1, 0)
    cols = jnp.minimum(2 * ow + 2, W) - jnp.maximum(2 * ow - 1, 0)
    recip = 1.0 / (rows[:, None] * cols[None, :]).astype(jnp.float32)
    recip = jnp.broadcast_to(recip[None], (N, Ho, Wo)).reshape(1, P)

    tile_p = _lane_tile(P)
    P_pad = _round_up(P, tile_p)
    if P_pad != P:
        xt = jnp.pad(xt, ((0, 0), (0, 0), (0, P_pad - P)))
        recip = jnp.pad(recip, ((0, 0), (0, P_pad - P)))
    n_blk = P_pad // tile_p

    out = pl.pallas_call(
        _avgpool_kernel,
        grid=(n_blk,),
        in_specs=[pl.BlockSpec((9, C, tile_p), lambda i: (0, 0, i)),
                  pl.BlockSpec((1, tile_p), lambda i: (0, i))],
        out_specs=pl.BlockSpec((C, tile_p), lambda i: (0, i)),
        out_shape=jax.ShapeDtypeStruct((C, P_pad), jnp.float32),
        compiler_params=_compiler_params(),
    )(xt, recip)
    return out[:, :P].reshape(C, N, Ho, Wo)


# ------------------------- parameters & model glue -------------------------- #

def init_nlayer_params(key, input_nc, ndf, n_layers):
    """Per-layer configs + deterministic random params for NLayerDiscriminator."""
    cfgs = [dict(cin=input_nc, cout=ndf, stride=2, bn=False, act=True)]
    nf = ndf
    for _ in range(1, n_layers):
        nf_prev, nf = nf, min(nf * 2, 512)
        cfgs.append(dict(cin=nf_prev, cout=nf, stride=2, bn=True, act=True))
    nf_prev, nf = nf, min(nf * 2, 512)
    cfgs.append(dict(cin=nf_prev, cout=nf, stride=1, bn=True, act=True))
    cfgs.append(dict(cin=nf, cout=1, stride=1, bn=False, act=False))

    params = []
    for cfg in cfgs:
        key, kw_, kb_, kg_, kbt_ = jax.random.split(key, 5)
        w_torch = 0.05 * jax.random.normal(kw_, (cfg["cout"], cfg["cin"], 4, 4), jnp.float32)
        b = 0.05 * jax.random.normal(kb_, (cfg["cout"],), jnp.float32)
        # (Cout,Cin,KH,KW) -> (Cout,KH,KW,Cin) -> (Cout, 16*Cin); K order is
        # tap-major / channel-minor, matching the channel-wise tap concat above.
        w_mat = jnp.transpose(w_torch, (0, 2, 3, 1)).reshape(cfg["cout"], 16 * cfg["cin"])
        p = dict(cfg, w_mat=w_mat, w_torch=w_torch, b=b)
        if cfg["bn"]:
            p["gamma"] = 1.0 + 0.05 * jax.random.normal(kg_, (cfg["cout"],), jnp.float32)
            p["beta"] = 0.05 * jax.random.normal(kbt_, (cfg["cout"],), jnp.float32)
        params.append(p)
    return params


def nlayer_forward(params, x_cnhw, compute_dtype=jnp.bfloat16):
    h = x_cnhw
    last = len(params) - 1
    for li, p in enumerate(params):
        fuse_lrelu = p["act"] and not p["bn"]
        out_dtype = jnp.float32 if li == last else compute_dtype   # bf16 intermediates
        y, stats = conv2d_pallas(
            h, p["w_mat"], p["b"], stride=p["stride"],
            apply_lrelu=fuse_lrelu, emit_stats=p["bn"],
            compute_dtype=compute_dtype, out_dtype=out_dtype)
        if p["bn"]:
            # BN scale/shift + LeakyReLU fused into the XLA glue that feeds the
            # next layer's im2col slab (no standalone Pallas pass / HBM round trip).
            mean, var = stats
            scale = p["gamma"] * jax.lax.rsqrt(var + BN_EPS)
            shift = p["beta"] - mean * scale
            y = y.astype(jnp.float32) * scale[:, None, None, None] + shift[:, None, None, None]
            y = jnp.where(y >= 0, y, NEG_SLOPE * y)
        h = y
    return h


def multiscale_forward(all_params, x_nchw, compute_dtype=jnp.bfloat16):
    """Matches MultiscaleDiscriminator.forward (getIntermFeat=False)."""
    num_D = len(all_params)
    x = jnp.transpose(x_nchw, (1, 0, 2, 3))          # NCHW -> CNHW (P on the lane axis)
    result, xd = [], x
    for i in range(num_D):
        p = all_params[num_D - 1 - i]
        out = nlayer_forward(p, xd, compute_dtype=compute_dtype)
        result.append([jnp.transpose(out, (1, 0, 2, 3))])   # back to NCHW
        if i != num_D - 1:
            xd = avgpool3_pallas(xd)
    return result


# ------------------------- pure-JAX reference check ------------------------- #

def _nlayer_ref(params, x_nhwc, compute_dtype):
    """Same numeric policy as the kernels: compute_dtype MXU inputs, f32 accum,
    compute_dtype intermediate storage, f32 BN stats from the pre-cast output."""
    h = x_nhwc
    last = len(params) - 1
    for li, p in enumerate(params):
        w_hwio = jnp.transpose(p["w_torch"], (2, 3, 1, 0)).astype(compute_dtype)
        y = jax.lax.conv_general_dilated(
            h.astype(compute_dtype), w_hwio, (p["stride"], p["stride"]),
            ((2, 2), (2, 2)), dimension_numbers=("NHWC", "HWIO", "NHWC"),
            preferred_element_type=jnp.float32) + p["b"]
        store_dtype = jnp.float32 if li == last else compute_dtype
        if p["bn"]:
            mean = jnp.mean(y, axis=(0, 1, 2))
            var = jnp.mean((y - mean) ** 2, axis=(0, 1, 2))
            y = y.astype(store_dtype).astype(jnp.float32)     # mimic bf16 y writeback
            scale = p["gamma"] * jax.lax.rsqrt(var + BN_EPS)
            y = y * scale + (p["beta"] - mean * scale)
            y = jnp.where(y >= 0, y, NEG_SLOPE * y)
        elif p["act"]:
            y = jnp.where(y >= 0, y, NEG_SLOPE * y)
            y = y.astype(store_dtype).astype(jnp.float32)
        h = y
    return h


def _avgpool_ref(x_nhwc):
    pads = [(0, 0), (1, 1), (1, 1), (0, 0)]
    s = jax.lax.reduce_window(x_nhwc, 0.0, jax.lax.add, (1, 3, 3, 1), (1, 2, 2, 1), pads)
    c = jax.lax.reduce_window(jnp.ones_like(x_nhwc[..., :1]), 0.0, jax.lax.add,
                              (1, 3, 3, 1), (1, 2, 2, 1), pads)
    return s / c


def multiscale_ref(all_params, x_nchw, compute_dtype):
    num_D = len(all_params)
    x = jnp.transpose(x_nchw, (0, 2, 3, 1))          # NCHW -> NHWC
    result, xd = [], x
    for i in range(num_D):
        p = all_params[num_D - 1 - i]
        result.append([jnp.transpose(_nlayer_ref(p, xd, compute_dtype), (0, 3, 1, 2))])
        if i != num_D - 1:
            xd = _avgpool_ref(xd)
    return result


# ------------------------------------ main ---------------------------------- #

if __name__ == "__main__":
    key = jax.random.PRNGKey(0)
    input_nc, ndf, n_layers, num_D = 4, 8, 3, 2
    N, H, W = 2, 16, 16

    key, kx = jax.random.split(key)
    x = jax.random.normal(kx, (N, input_nc, H, W), jnp.float32)

    all_params = []
    for _ in range(num_D):
        key, kd = jax.random.split(key)
        all_params.append(init_nlayer_params(kd, input_nc, ndf, n_layers))

    # bf16-MXU / bf16-intermediate fast path (default).
    out_bf16 = jax.block_until_ready(
        multiscale_forward(all_params, x, compute_dtype=jnp.bfloat16))
    ref_bf16 = multiscale_ref(all_params, x, compute_dtype=jnp.bfloat16)

    # f32 path reproduces the PyTorch float32 forward semantics.
    out_f32 = jax.block_until_ready(
        multiscale_forward(all_params, x, compute_dtype=jnp.float32))
    ref_f32 = multiscale_ref(all_params, x, compute_dtype=jnp.float32)

    ok = True
    for o, r in zip(out_bf16, ref_bf16):
        ok = ok and (o[0].shape == r[0].shape)
        ok = ok and bool(jnp.allclose(o[0], r[0], rtol=1e-2, atol=1e-2))
    for o, r in zip(out_f32, ref_f32):
        ok = ok and (o[0].shape == r[0].shape)
        ok = ok and bool(jnp.allclose(o[0], r[0], rtol=1e-3, atol=1e-3))
    assert ok, "Pallas output mismatch vs reference"
    print("KERNEL_OK")
</pallas_src>

<mosaic_0001>
module attributes {stable_mosaic.version = 11 : i64} {
  func.func @_conv_kernel(%arg0: i32, %arg1: memref<64x256xbf16, #tpu.memory_space<vmem>>, %arg2: memref<8x64xbf16, #tpu.memory_space<vmem>>, %arg3: memref<8x1xf32, #tpu.memory_space<vmem>>, %arg4: memref<8x256xbf16, #tpu.memory_space<vmem>>) attributes {dimension_semantics = [#tpu.dimension_semantics<parallel>], iteration_bounds = array<i64: 1>, scalar_prefetch = 0 : i64, scratch_operands = 0 : i64, tpu.core_type = #tpu.core_type<tc>, window_params = [{transform_indices = @transform_0, window_bounds = array<i64: 64, 256>}, {pipeline_mode = #tpu.pipeline_mode<synchronous>, transform_indices = @transform_1, window_bounds = array<i64: 8, 64>}, {pipeline_mode = #tpu.pipeline_mode<synchronous>, transform_indices = @transform_2, window_bounds = array<i64: 8, 1>}, {transform_indices = @transform_3, window_bounds = array<i64: 8, 256>}]} {
    %c0 = arith.constant 0 : index
    %c0_0 = arith.constant 0 : index
    %0 = vector.load %arg2[%c0, %c0_0] : memref<8x64xbf16, #tpu.memory_space<vmem>>, vector<8x64xbf16>
    %c0_1 = arith.constant 0 : index
    %c0_2 = arith.constant 0 : index
    %1 = vector.load %arg1[%c0_1, %c0_2] : memref<64x256xbf16, #tpu.memory_space<vmem>>, vector<64x256xbf16>
    %cst = arith.constant dense<0.000000e+00> : vector<8x256xf32>
    %2 = tpu.matmul %0, %1, %cst {dimension_numbers = #tpu.dot_dimension_numbers<[1], [0], [0], [1], [0, 0, 1, 1], [], []>} : vector<8x64xbf16>, vector<64x256xbf16>, vector<8x256xf32> -> vector<8x256xf32>
    %c0_3 = arith.constant 0 : index
    %c0_4 = arith.constant 0 : index
    %3 = vector.load %arg3[%c0_3, %c0_4] : memref<8x1xf32, #tpu.memory_space<vmem>>, vector<8x1xf32>
    %4 = vector.broadcast %3 : vector<8x1xf32> to vector<8x256xf32>
    %5 = arith.addf %2, %4 : vector<8x256xf32>
    %cst_5 = arith.constant 0.000000e+00 : f32
    %6 = vector.broadcast %cst_5 : f32 to vector<8x256xf32>
    %7 = arith.cmpf oge, %5, %6 : vector<8x256xf32>
    %cst_6 = arith.constant 2.000000e-01 : f32
    %8 = vector.broadcast %cst_6 : f32 to vector<8x256xf32>
    %9 = arith.mulf %5, %8 : vector<8x256xf32>
    %10 = arith.select %7, %5, %9 : vector<8x256xi1>, vector<8x256xf32>
    %11 = arith.truncf %10 : vector<8x256xf32> to vector<8x256xbf16>
    %c0_7 = arith.constant 0 : index
    %c0_8 = arith.constant 0 : index
    %12 = vector.load %arg4[%c0_7, %c0_8] : memref<8x256xbf16, #tpu.memory_space<vmem>>, vector<8x256xbf16>
    tpu.vector_store %arg4[%c0_7, %c0_8], %11 {strides = array<i32>} : memref<8x256xbf16, #tpu.memory_space<vmem>>, vector<8x256xbf16>,
    return
  }
  func.func @transform_0(%arg0: i32) -> (i32, i32) {
    %c0_i32 = arith.constant 0 : i32
    %c0_i32_0 = arith.constant 0 : i32
    return %c0_i32, %arg0 : i32, i32
  }
  func.func @transform_1(%arg0: i32) -> (i32, i32) {
    %c0_i32 = arith.constant 0 : i32
    %c0_i32_0 = arith.constant 0 : i32
    %c0_i32_1 = arith.constant 0 : i32
    return %c0_i32, %c0_i32_0 : i32, i32
  }
  func.func @transform_2(%arg0: i32) -> (i32, i32) {
    %c0_i32 = arith.constant 0 : i32
    %c0_i32_0 = arith.constant 0 : i32
    %c0_i32_1 = arith.constant 0 : i32
    return %c0_i32, %c0_i32_0 : i32, i32
  }
  func.func @transform_3(%arg0: i32) -> (i32, i32) {
    %c0_i32 = arith.constant 0 : i32
    %c0_i32_0 = arith.constant 0 : i32
    return %c0_i32, %arg0 : i32, i32
  }
}

</mosaic_0001>

<bundles_post_ra>
// kernel: tpu_custom_call.1
= control target key start
LH: loop header
LB: loop body
LE: loop exit
PB: predicated region body
PF: predicated region fallthrough
CT: control target
= control target key end

     0   :  { %8 = vsyncpa [#allocation3], 0  ;;  %s292_s0 = inlined_call_operand.hbm [shape: bf16[64,256], index: 0, kind: input, shape index: {}]   ;;  %s293_s1 = inlined_call_operand.vmem [shape: bf16[8,64], index: 1, kind: input, shape index: {}]   ;;  %s294_s2 = inlined_call_operand.vmem [shape: f32[8,1], index: 2, kind: input, shape index: {}]   ;;  %s295_s3 = inlined_call_operand.hbm [shape: bf16[8,256], index: 3, kind: output, shape index: {}]  }
   0x1   :  { %9 = vsyncpa [#allocation4], 0  ;;  %s237_s12 = smov [#allocation2]   ;;  %s189_s16 = scalar_lea.hbm %s292_s0, 1024 }
   0x2   :  { %s15_s13 = sshll.u32 %s237_s12, 4  ;;  %p190_p0 = scmp.ne.s32.totalorder %s292_s0, %s189_s16  ;;  %s16_s13 = int_to_ptr.vmem [resolvable:$true] %s15_s13 }
   0x3   :  { %p193_p1 = scmp.lt.u32.totalorder %s189_s16, %s292_s0 }
   0x5   :  { %p195_p2 = pnand %p193_p1, %p190_p0 }
   0x7   :  { %198 = shalt.err (!%p195_p2)
}
   0x8   :  { %s199_s21 = scalar_lea.vmem %s16_s13, 1024  ;;  %p204_p4 = scmp.lt.s32.totalorder %s16_s13, %s16_s13 }
   0x9   :  { %p200_p3 = scmp.ne.s32.totalorder %s16_s13, %s199_s21  ;;  %p205_p5 = scmp.lt.s32.totalorder %s199_s21, %s199_s21 }
   0xb   :  { %p206_p6 = por %p205_p5, %p204_p4 }
   0xd   :  { %p207_p7 = pnand %p206_p6, %p200_p3 }
   0xf   :  { %210 = shalt.err (!%p207_p7)
}
  0x10   :  { %s238_s22 = smov 128   ;;  %s239_s23 = smov 8  }
  0x11   :  { %21 = dma.hbm_to_vmem [thread:$0]  %s292_s0, 1024, %s16_s13, [#allocation3], %s238_s22, %s238_s22, %s239_s23  }
  0x12   :  { %233 = dma.done.wait [#allocation3], 1024  }
  0x13   :  { %234 = vsyncadd [#allocation3], 4294966272  ;;  %v240_v0 = vmov 0   ;;  %v177_v1 = vld [vmem:[#allocation2 + $0x4] ss:$8 sps:$4 sm:$0xff]   ;;  %vm85_vm0 = vcmask 523264  }
  0x14   :  { %121 = vmatprep.mubr.bf16.mxu0 %v240_v0  ;;  %176 = vset.pattern.permute.xlu0 %v240_v0  ;;  %v179_v2 = vld [vmem:[#allocation2] ss:$8 sps:$4 sm:$0xff]   ;;  %v180_v3 = vld [vmem:[#allocation2 + $0x14] ss:$8 sps:$4 sm:$0xff]   ;;  %v182_v4 = vld [vmem:[#allocation2 + $0x10] ss:$8 sps:$4 sm:$0xff]  }
  0x15   :  { %89 = vmatprep.subr.bf16.mxu0 %v177_v1  ;;  %v183_v5 = vld [vmem:[#allocation2 + $0x24] ss:$8 sps:$4 sm:$0xff]   ;;  %v185_v7 = vld [vmem:[#allocation2 + $0x20] ss:$8 sps:$4 sm:$0xff]   ;;  %v186_v8 = vld [vmem:[#allocation2 + $0x34] ss:$8 sps:$4 sm:$0xff]  }
  0x16   :  { %90 = vmatpush1.bf16.msra.mxu0 %v179_v2  ;;  %v39_v6 = vld [vmem:[%s294_s2] sm:$0xff]  ;;  %v188_v9 = vld [vmem:[#allocation2 + $0x30] ss:$8 sps:$4 sm:$0xff]   ;;  %s241_s2 = smov [#allocation5]  }
  0x17   :  { %91 = vmatprep.subr.bf16.mxu0 %v180_v3  ;;  %42 = vperm.xlu0 %176, %v39_v6   ;;  %v30_v10 = vld [vmem:[%s293_s1] sm:$0xf]  ;;  %s151_s29 = sshll.u32 %s241_s2, 4  ;;  %s152_s29 = int_to_ptr.vmem [resolvable:$true] %s151_s29 }
  0x18   :  { %s211_s1 = scalar_lea.vmem %s152_s29, 128  ;;  %p216_p9 = scmp.lt.s32.totalorder %s152_s29, %s152_s29 }
  0x19   :  { %p212_p8 = scmp.ne.s32.totalorder %s152_s29, %s211_s1  ;;  %p217_p10 = scmp.lt.s32.totalorder %s211_s1, %s211_s1 }
  0x1a   :  { %92 = vmatpush1.bf16.msra.mxu0 %v182_v4 }
  0x1b   :  { %93 = vmatprep.subr.bf16.mxu0 %v183_v5  ;;  %p218_p11 = por %p217_p10, %p216_p9 }
  0x1d   :  { %p219_p12 = pnand %p218_p11, %p212_p8 }
  0x1e   :  { %94 = vmatpush1.bf16.msra.mxu0 %v185_v7 }
  0x1f   :  { %95 = vmatprep.subr.bf16.mxu0 %v186_v8 }
  0x22   :  { %96 = vmatpush1.bf16.msra.mxu0 %v188_v9 }
  0x25   :  { %168 = vmatmul.mubr.msk.bf16.vlgmr.msra.gmra.mrb[0].mxu0 %vm85_vm0, %v30_v10 }
  0x96   :  { %v43_v11 = vpop.permute.xlu0 %42 }
  0xf8   :  { %v123_v12 = vpop.f32.mrb[0].mxu0 }
  0xf9   :  { %v124_v13 = vadd.f32 %v123_v12, %v43_v11  ;;  %v125_v14 = vpop.f32.mrb[1].mxu0 }
  0xfa   :  { %v126_v15 = vadd.f32 %v125_v14, %v43_v11  ;;  %v127_v16 = vpop.f32.mrb[2].mxu0 }
  0xfb   :  { %vm130_vm1 = vcmp.ge.f32.partialorder %v124_v13, 0.0  ;;  %v132_v17 = vmul.f32 0.2, %v124_v13  ;;  %v128_v18 = vpop.f32.mrb[3].mxu0 }
  0xfc   :  { %vm131_vm2 = vcmp.ge.f32.partialorder %v126_v15, 0.0  ;;  %v133_v19 = vmul.f32 0.2, %v126_v15 }
  0xfd   :  { %v134_v20 = vsel %vm130_vm1, %v124_v13, %v132_v17 }
  0xfe   :  { %v135_v21 = vsel %vm131_vm2, %v126_v15, %v133_v19 }
  0xff   :  { %v170_v22 = vpack.c.bf16 %v135_v21, %v134_v20 }
 0x101   :  { %144 = vst [vmem:[#allocation5] sm:$0xff] %v170_v22 }
 0x102   :  { %222 = shalt.err (!%p219_p12)
}
 0x103   :  { %s223_s5 = scalar_lea.hbm %s295_s3, 128 }
 0x104   :  { %p224_p13 = scmp.ne.s32.totalorder %s295_s3, %s223_s5  ;;  %p227_p0 = scmp.lt.u32.totalorder %s223_s5, %s295_s3 }
 0x106   :  { %p229_p1 = pnand %p227_p0, %p224_p13 }
 0x108   :  { %232 = shalt.err (!%p229_p1)
}
 0x109   :  { %154 = dma.vmem_to_hbm [thread:$0]  %s152_s29, 128, %s295_s3, [#allocation4]  }
 0x10a   :  { %235 = dma.done.wait [#allocation4], 128  }
 0x10b   :  { %236 = vsyncadd [#allocation4], 4294967168 }
 0x10c   :  { %158 = vsyncpa [#allocation3], 1 }
 0x10d   :  { %159 = vsyncpa [#allocation4], 1 }

</bundles_post_ra>
